<compile_context>
chip_gen: v6e
topology: v6e:2x2x1
jax: 0.10.0
libtpu: 0.0.40
codegen_flags: <defaults>
</compile_context>

<pallas_src>
import numpy as np

import jax
import jax.numpy as jnp
from jax.experimental import pallas as pl
from jax.experimental.pallas import tpu as pltpu


# ---------------------------------------------------------------------------
# helpers
# ---------------------------------------------------------------------------
def _round_up(x, m):
    return ((x + m - 1) // m) * m


def _pick_spatial_block(hw, target):
    """Largest spatial block <= target that is a multiple of 128 dividing hw,
    or the full extent if hw is small / has no such divisor."""
    target = max(128, (int(target) // 128) * 128)
    if hw <= target:
        return hw
    for blk in range(target, 0, -128):
        if hw % blk == 0:
            return blk
    return hw  # fall back to untiled for this map


def _make_index_map(nblk, n_steps):
    if nblk == n_steps:
        return lambda s: (0, 0, s)
    if nblk == 1:
        return lambda s: (0, 0, 0)
    last = nblk - 1
    return lambda s: (0, 0, jnp.minimum(s, last))  # clamp => no re-DMA after exhaustion


# ---------------------------------------------------------------------------
# Fused kernel: tiled 5x global-avg-pool (as sums) + single FC + bias + sigmoid
# ---------------------------------------------------------------------------
def _make_channel_att_kernel(map_meta, n_steps):
    """map_meta: tuple of (lane_offset, c_i, n_blocks_i) per feature map."""

    def kernel(x1, x2, x3, x4, x5, w_ref, b_ref, o_ref, acc_ref):
        # x_i   : (B, C_i, sb_i) block of the flattened feature map (native dtype)
        # w_ref : (Csum, Cpad) f32  -- band(conv1d) @ concat(W_heads), 1/HW folded in
        # b_ref : (1, Cpad)    f32  -- concatenated head biases, zero padded
        # o_ref : (B, Cpad)    f32  -- sigmoid(pooled_sum @ W + b), all heads fused
        # acc   : (B, Csum)    f32  -- running spatial sums (VMEM scratch)
        x_refs = (x1, x2, x3, x4, x5)
        s = pl.program_id(0)

        @pl.when(s == 0)
        def _init():
            acc_ref[...] = jnp.zeros_like(acc_ref)

        for x_ref, (off, ci, nblk) in zip(x_refs, map_meta):
            def _accum(x_ref=x_ref, off=off, ci=ci):
                # f32 accumulation of the spatial sum (bf16-input safe).
                part = jnp.sum(x_ref[...].astype(jnp.float32), axis=-1)  # (B, C_i)
                acc_ref[:, off:off + ci] = acc_ref[:, off:off + ci] + part

            if nblk == n_steps:
                _accum()                       # contributes on every step
            else:
                pl.when(s < nblk)(_accum)      # smaller maps finish early

        @pl.when(s == n_steps - 1)
        def _finish():
            logits = jnp.dot(acc_ref[...], w_ref[...],
                             preferred_element_type=jnp.float32) + b_ref[...]
            o_ref[...] = jax.nn.sigmoid(logits).astype(o_ref.dtype)

    return kernel


# ---------------------------------------------------------------------------
# Hoisted (once per parameter update) preprocessing:
#   fold Conv1d(1,1,3,pad=1) band + 1/(H*W) pooling scale into the FC weights,
#   pad to lane-dense 128 output columns.
# ---------------------------------------------------------------------------
def prepare_channel_att_params(params, t_shapes):
    ws, bs, conv_w = params["ws"], params["bs"], params["conv_w"]
    c_ins = [int(s[1]) for s in t_shapes]
    csum = sum(c_ins)
    assert all(int(w.shape[0]) == csum for w in ws)
    c_outs = [int(w.shape[1]) for w in ws]
    ctot = sum(c_outs)
    cpad = _round_up(ctot, 128)

    # Tridiagonal band matrix encoding Conv1d(1, 1, k=3, pad=1, bias=False).
    r = jnp.arange(csum)[:, None]
    c = jnp.arange(csum)[None, :]
    cw = conv_w.reshape(-1).astype(jnp.float32)
    band = (jnp.where(c - r == 1, cw[0], 0.0)
            + jnp.where(c == r, cw[1], 0.0)
            + jnp.where(r - c == 1, cw[2], 0.0))

    w_cat = jnp.concatenate([w.astype(jnp.float32) for w in ws], axis=1)   # (Csum, Ctot)
    w_eff = band @ w_cat                                                   # (Csum, Ctot)

    # Fold the AdaptiveAvgPool2d(1) scaling so the kernel only accumulates sums.
    inv_hw = np.concatenate(
        [np.full((ci,), 1.0 / float(s[2] * s[3]), np.float32)
         for ci, s in zip(c_ins, t_shapes)])
    w_eff = jnp.asarray(inv_hw)[:, None] * w_eff

    w_pad = jnp.zeros((csum, cpad), jnp.float32).at[:, :ctot].set(w_eff)
    b_cat = jnp.concatenate([b.reshape(1, -1).astype(jnp.float32) for b in bs], axis=1)
    b_pad = jnp.zeros((1, cpad), jnp.float32).at[:, :ctot].set(b_cat)

    return {"w_pad": w_pad, "b_pad": b_pad,
            "c_ins": c_ins, "c_outs": c_outs,
            "csum": csum, "ctot": ctot, "cpad": cpad,
            "hw": [int(s[2] * s[3]) for s in t_shapes]}


# ---------------------------------------------------------------------------
# Wrappers
# ---------------------------------------------------------------------------
def channel_att_bridge_attention(ts, prepped, *, spatial_block=1024):
    """Compact attention: tuple of (B, C_i, 1, 1) tensors (no expand_as yet)."""
    B = int(ts[0].shape[0])
    c_ins = [int(t.shape[1]) for t in ts]
    hws = [int(t.shape[2] * t.shape[3]) for t in ts]
    csum, ctot, cpad = prepped["csum"], prepped["ctot"], prepped["cpad"]
    assert sum(c_ins) == csum
    assert hws == prepped["hw"], \
        "spatial sizes changed: re-run prepare_channel_att_params"

    # Spatially flattened NCHW views (free reshape, native dtype kept).
    xs = [t.reshape(B, ci, hw) for t, ci, hw in zip(ts, c_ins, hws)]

    # Per-map spatial tiling; grid length = max #blocks across maps.
    sbs = [_pick_spatial_block(hw, spatial_block) for hw in hws]
    nblks = [hw // sb for hw, sb in zip(hws, sbs)]
    n_steps = max(nblks)

    offs, off = [], 0
    for ci in c_ins:
        offs.append(off)
        off += ci

    in_specs = [pl.BlockSpec((B, ci, sb), _make_index_map(nblk, n_steps))
                for ci, sb, nblk in zip(c_ins, sbs, nblks)]
    in_specs.append(pl.BlockSpec((csum, cpad), lambda s: (0, 0)))   # weights resident
    in_specs.append(pl.BlockSpec((1, cpad), lambda s: (0, 0)))      # bias resident
    out_spec = pl.BlockSpec((B, cpad), lambda s: (0, 0))            # lane-dense output

    # Explicit VMEM budget (double-buffered inputs + resident params), v7x-safe.
    x_bytes = sum(2 * B * ci * sb * t.dtype.itemsize
                  for t, ci, sb in zip(ts, c_ins, sbs))
    param_bytes = (csum * cpad + cpad + 2 * B * cpad + B * csum) * 4
    vmem_limit = int(min(max(2 * (x_bytes + param_bytes) + (1 << 20), 16 << 20),
                         64 << 20))

    kernel = _make_channel_att_kernel(tuple(zip(offs, c_ins, nblks)), n_steps)

    att = pl.pallas_call(
        kernel,
        out_shape=jax.ShapeDtypeStruct((B, cpad), jnp.float32),
        grid_spec=pltpu.PrefetchScalarGridSpec(
            num_scalar_prefetch=0,
            grid=(n_steps,),
            in_specs=in_specs,
            out_specs=out_spec,
            scratch_shapes=[pltpu.VMEM((B, csum), jnp.float32)],
        ),
        compiler_params=pltpu.CompilerParams(
            dimension_semantics=("arbitrary",),
            vmem_limit_bytes=vmem_limit),
    )(*xs, prepped["w_pad"], prepped["b_pad"])

    outs, off = [], 0
    for co in prepped["c_outs"]:
        outs.append(att[:, off:off + co][:, :, None, None])   # (B, C_i, 1, 1)
        off += co
    return tuple(outs)


def channel_att_bridge(ts, params, *, spatial_block=1024):
    """Module-faithful output: attention broadcast to each t_i's shape (expand_as).

    Prefer hoisting prepare_channel_att_params() out of the step function and
    consuming the compact (B, C, 1, 1) attention so the channel-wise multiply
    can fuse downstream.
    """
    prepped = prepare_channel_att_params(params, [t.shape for t in ts])
    atts = channel_att_bridge_attention(ts, prepped, spatial_block=spatial_block)
    return tuple(jnp.broadcast_to(a, t.shape).astype(t.dtype)
                 for a, t in zip(atts, ts))


# ---------------------------------------------------------------------------
# Pure-JAX reference (mirrors the PyTorch module exactly)
# ---------------------------------------------------------------------------
def reference(ts, params):
    pooled = jnp.concatenate([t.mean(axis=(2, 3)) for t in ts], axis=1)
    cw = params["conv_w"].reshape(-1)
    pad = jnp.pad(pooled, ((0, 0), (1, 1)))
    att = cw[0] * pad[:, :-2] + cw[1] * pad[:, 1:-1] + cw[2] * pad[:, 2:]
    outs = []
    for t, w, b in zip(ts, params["ws"], params["bs"]):
        a = jax.nn.sigmoid(att @ w + b)
        outs.append(jnp.broadcast_to(a[:, :, None, None], t.shape))
    return tuple(outs)


if __name__ == "__main__":
    key = jax.random.PRNGKey(0)
    # c_list has 6 entries in H_vmunet; t1..t5 use c_list[0:5]
    c_list = [4, 8, 12, 16, 24, 32]
    spatial = [16, 16, 8, 8, 4]
    B = 2
    csum = sum(c_list) - c_list[-1]  # 64

    keys = jax.random.split(key, 16)
    ts = tuple(
        jax.random.normal(keys[i], (B, c_list[i], spatial[i], spatial[i]), jnp.float32)
        for i in range(5)
    )

    # Synthetic parameters: Conv1d weight (1,1,3) flattened; Linear W^T and bias.
    conv_w = jax.random.normal(keys[5], (3,), jnp.float32) * 0.5
    ws = [jax.random.normal(keys[6 + i], (csum, c_list[i]), jnp.float32) * 0.1
          for i in range(5)]
    bs = [jax.random.normal(keys[11 + i], (1, c_list[i]), jnp.float32) * 0.1
          for i in range(5)]
    params = {"conv_w": conv_w, "ws": ws, "bs": bs}

    # Hoisted parameter preprocessing (once per parameter update, not per step).
    prepped = prepare_channel_att_params(params, [t.shape for t in ts])

    # spatial_block=128 so the tiled-reduction grid (2 steps) is exercised even
    # at these toy spatial extents; production callers use the larger default.
    atts = channel_att_bridge_attention(ts, prepped, spatial_block=128)
    outs = tuple(jnp.broadcast_to(a, t.shape).astype(t.dtype)
                 for a, t in zip(atts, ts))
    outs = jax.block_until_ready(outs)

    refs = reference(ts, params)
    for o, r, t in zip(outs, refs, ts):
        assert o.shape == t.shape, (o.shape, t.shape)
        assert jnp.allclose(o, r, atol=1e-4, rtol=1e-4), "mismatch vs reference"

    print("KERNEL_OK")
</pallas_src>

<mosaic_0001>
module attributes {stable_mosaic.version = 11 : i64} {
  func.func @kernel(%arg0: i32, %arg1: memref<2x4x128xf32, #tpu.memory_space<vmem>>, %arg2: memref<2x8x128xf32, #tpu.memory_space<vmem>>, %arg3: memref<2x12x64xf32, #tpu.memory_space<vmem>>, %arg4: memref<2x16x64xf32, #tpu.memory_space<vmem>>, %arg5: memref<2x24x16xf32, #tpu.memory_space<vmem>>, %arg6: memref<64x128xf32, #tpu.memory_space<vmem>>, %arg7: memref<1x128xf32, #tpu.memory_space<vmem>>, %arg8: memref<2x128xf32, #tpu.memory_space<vmem>>, %arg9: memref<2x64xf32, #tpu.memory_space<vmem>>) attributes {dimension_semantics = [#tpu.dimension_semantics<arbitrary>], iteration_bounds = array<i64: 2>, scalar_prefetch = 0 : i64, scratch_operands = 1 : i64, tpu.core_type = #tpu.core_type<tc>, window_params = [{transform_indices = @transform_0, window_bounds = array<i64: 2, 4, 128>}, {transform_indices = @transform_1, window_bounds = array<i64: 2, 8, 128>}, {pipeline_mode = #tpu.pipeline_mode<synchronous>, transform_indices = @transform_2, window_bounds = array<i64: 2, 12, 64>}, {pipeline_mode = #tpu.pipeline_mode<synchronous>, transform_indices = @transform_3, window_bounds = array<i64: 2, 16, 64>}, {pipeline_mode = #tpu.pipeline_mode<synchronous>, transform_indices = @transform_4, window_bounds = array<i64: 2, 24, 16>}, {pipeline_mode = #tpu.pipeline_mode<synchronous>, transform_indices = @transform_5, window_bounds = array<i64: 64, 128>}, {pipeline_mode = #tpu.pipeline_mode<synchronous>, transform_indices = @transform_6, window_bounds = array<i64: 1, 128>}, {pipeline_mode = #tpu.pipeline_mode<synchronous>, transform_indices = @transform_7, window_bounds = array<i64: 2, 128>}]} {
    %c0_i32 = arith.constant 0 : i32
    %0 = arith.cmpi eq, %arg0, %c0_i32 : i32
    %1 = arith.extui %0 : i1 to i32
    %c0_i32_0 = arith.constant 0 : i32
    %2 = arith.cmpi ne, %1, %c0_i32_0 : i32
    scf.if %2 {
      %cst_21 = arith.constant 0.000000e+00 : f32
      %25 = vector.broadcast %cst_21 : f32 to vector<2x64xf32>
      %c0_22 = arith.constant 0 : index
      %c0_23 = arith.constant 0 : index
      %26 = vector.load %arg9[%c0_22, %c0_23] : memref<2x64xf32, #tpu.memory_space<vmem>>, vector<2x64xf32>
      tpu.vector_store %arg9[%c0_22, %c0_23], %25 {strides = array<i32>} : memref<2x64xf32, #tpu.memory_space<vmem>>, vector<2x64xf32>,
    } else {
    }
    %c0 = arith.constant 0 : index
    %c0_1 = arith.constant 0 : index
    %c0_2 = arith.constant 0 : index
    %3 = vector.load %arg1[%c0, %c0_1, %c0_2] : memref<2x4x128xf32, #tpu.memory_space<vmem>>, vector<2x4x128xf32>
    %cst = arith.constant dense<0.000000e+00> : vector<2x4xf32>
    %4 = vector.multi_reduction <add>, %3, %cst [2] : vector<2x4x128xf32> to vector<2x4xf32>
    %c0_3 = arith.constant 0 : index
    %c0_4 = arith.constant 0 : index
    %5 = vector.load %arg9[%c0_3, %c0_4] : memref<2x64xf32, #tpu.memory_space<vmem>>, vector<2x4xf32>
    %6 = arith.addf %5, %4 : vector<2x4xf32>
    %c0_5 = arith.constant 0 : index
    %c0_6 = arith.constant 0 : index
    %7 = vector.load %arg9[%c0_5, %c0_6] : memref<2x64xf32, #tpu.memory_space<vmem>>, vector<2x4xf32>
    tpu.vector_store %arg9[%c0_5, %c0_6], %6 {strides = array<i32>} : memref<2x64xf32, #tpu.memory_space<vmem>>, vector<2x4xf32>,
    %c0_7 = arith.constant 0 : index
    %c0_8 = arith.constant 0 : index
    %c0_9 = arith.constant 0 : index
    %8 = vector.load %arg2[%c0_7, %c0_8, %c0_9] : memref<2x8x128xf32, #tpu.memory_space<vmem>>, vector<2x8x128xf32>
    %cst_10 = arith.constant dense<0.000000e+00> : vector<2x8xf32>
    %9 = vector.multi_reduction <add>, %8, %cst_10 [2] : vector<2x8x128xf32> to vector<2x8xf32>
    %c0_11 = arith.constant 0 : index
    %c4 = arith.constant 4 : index
    %10 = vector.load %arg9[%c0_11, %c4] : memref<2x64xf32, #tpu.memory_space<vmem>>, vector<2x8xf32>
    %11 = arith.addf %10, %9 : vector<2x8xf32>
    %c0_12 = arith.constant 0 : index
    %c4_13 = arith.constant 4 : index
    %12 = vector.load %arg9[%c0_12, %c4_13] : memref<2x64xf32, #tpu.memory_space<vmem>>, vector<2x8xf32>
    tpu.vector_store %arg9[%c0_12, %c4_13], %11 {strides = array<i32>} : memref<2x64xf32, #tpu.memory_space<vmem>>, vector<2x8xf32>,
    %c1_i32 = arith.constant 1 : i32
    %13 = arith.cmpi slt, %arg0, %c1_i32 : i32
    %14 = arith.extui %13 : i1 to i32
    %c0_i32_14 = arith.constant 0 : i32
    %15 = arith.cmpi ne, %14, %c0_i32_14 : i32
    scf.if %15 {
      %c0_21 = arith.constant 0 : index
      %c0_22 = arith.constant 0 : index
      %c0_23 = arith.constant 0 : index
      %25 = vector.load %arg3[%c0_21, %c0_22, %c0_23] : memref<2x12x64xf32, #tpu.memory_space<vmem>>, vector<2x12x64xf32>
      %cst_24 = arith.constant dense<0.000000e+00> : vector<2x12xf32>
      %26 = vector.multi_reduction <add>, %25, %cst_24 [2] : vector<2x12x64xf32> to vector<2x12xf32>
      %c0_25 = arith.constant 0 : index
      %c12 = arith.constant 12 : index
      %27 = vector.load %arg9[%c0_25, %c12] : memref<2x64xf32, #tpu.memory_space<vmem>>, vector<2x12xf32>
      %28 = arith.addf %27, %26 : vector<2x12xf32>
      %c0_26 = arith.constant 0 : index
      %c12_27 = arith.constant 12 : index
      %29 = vector.load %arg9[%c0_26, %c12_27] : memref<2x64xf32, #tpu.memory_space<vmem>>, vector<2x12xf32>
      tpu.vector_store %arg9[%c0_26, %c12_27], %28 {strides = array<i32>} : memref<2x64xf32, #tpu.memory_space<vmem>>, vector<2x12xf32>,
    } else {
    }
    %c1_i32_15 = arith.constant 1 : i32
    %16 = arith.cmpi slt, %arg0, %c1_i32_15 : i32
    %17 = arith.extui %16 : i1 to i32
    %c0_i32_16 = arith.constant 0 : i32
    %18 = arith.cmpi ne, %17, %c0_i32_16 : i32
    scf.if %18 {
      %c0_21 = arith.constant 0 : index
      %c0_22 = arith.constant 0 : index
      %c0_23 = arith.constant 0 : index
      %25 = vector.load %arg4[%c0_21, %c0_22, %c0_23] : memref<2x16x64xf32, #tpu.memory_space<vmem>>, vector<2x16x64xf32>
      %cst_24 = arith.constant dense<0.000000e+00> : vector<2x16xf32>
      %26 = vector.multi_reduction <add>, %25, %cst_24 [2] : vector<2x16x64xf32> to vector<2x16xf32>
      %c0_25 = arith.constant 0 : index
      %c24 = arith.constant 24 : index
      %27 = vector.load %arg9[%c0_25, %c24] : memref<2x64xf32, #tpu.memory_space<vmem>>, vector<2x16xf32>
      %28 = arith.addf %27, %26 : vector<2x16xf32>
      %c0_26 = arith.constant 0 : index
      %c24_27 = arith.constant 24 : index
      %29 = vector.load %arg9[%c0_26, %c24_27] : memref<2x64xf32, #tpu.memory_space<vmem>>, vector<2x16xf32>
      tpu.vector_store %arg9[%c0_26, %c24_27], %28 {strides = array<i32>} : memref<2x64xf32, #tpu.memory_space<vmem>>, vector<2x16xf32>,
    } else {
    }
    %c1_i32_17 = arith.constant 1 : i32
    %19 = arith.cmpi slt, %arg0, %c1_i32_17 : i32
    %20 = arith.extui %19 : i1 to i32
    %c0_i32_18 = arith.constant 0 : i32
    %21 = arith.cmpi ne, %20, %c0_i32_18 : i32
    scf.if %21 {
      %c0_21 = arith.constant 0 : index
      %c0_22 = arith.constant 0 : index
      %c0_23 = arith.constant 0 : index
      %25 = vector.load %arg5[%c0_21, %c0_22, %c0_23] : memref<2x24x16xf32, #tpu.memory_space<vmem>>, vector<2x24x16xf32>
      %cst_24 = arith.constant dense<0.000000e+00> : vector<2x24xf32>
      %26 = vector.multi_reduction <add>, %25, %cst_24 [2] : vector<2x24x16xf32> to vector<2x24xf32>
      %c0_25 = arith.constant 0 : index
      %c40 = arith.constant 40 : index
      %27 = vector.load %arg9[%c0_25, %c40] : memref<2x64xf32, #tpu.memory_space<vmem>>, vector<2x24xf32>
      %28 = arith.addf %27, %26 : vector<2x24xf32>
      %c0_26 = arith.constant 0 : index
      %c40_27 = arith.constant 40 : index
      %29 = vector.load %arg9[%c0_26, %c40_27] : memref<2x64xf32, #tpu.memory_space<vmem>>, vector<2x24xf32>
      tpu.vector_store %arg9[%c0_26, %c40_27], %28 {strides = array<i32>} : memref<2x64xf32, #tpu.memory_space<vmem>>, vector<2x24xf32>,
    } else {
    }
    %c1_i32_19 = arith.constant 1 : i32
    %22 = arith.cmpi eq, %arg0, %c1_i32_19 : i32
    %23 = arith.extui %22 : i1 to i32
    %c0_i32_20 = arith.constant 0 : i32
    %24 = arith.cmpi ne, %23, %c0_i32_20 : i32
    scf.if %24 {
      %c0_21 = arith.constant 0 : index
      %c0_22 = arith.constant 0 : index
      %25 = vector.load %arg9[%c0_21, %c0_22] : memref<2x64xf32, #tpu.memory_space<vmem>>, vector<2x64xf32>
      %c0_23 = arith.constant 0 : index
      %c0_24 = arith.constant 0 : index
      %26 = vector.load %arg6[%c0_23, %c0_24] : memref<64x128xf32, #tpu.memory_space<vmem>>, vector<64x128xf32>
      %cst_25 = arith.constant dense<0.000000e+00> : vector<2x128xf32>
      %27 = tpu.matmul %25, %26, %cst_25 {dimension_numbers = #tpu.dot_dimension_numbers<[1], [0], [0], [1], [0, 0, 1, 1], [], []>} : vector<2x64xf32>, vector<64x128xf32>, vector<2x128xf32> -> vector<2x128xf32>
      %c0_26 = arith.constant 0 : index
      %c0_27 = arith.constant 0 : index
      %28 = vector.load %arg7[%c0_26, %c0_27] : memref<1x128xf32, #tpu.memory_space<vmem>>, vector<1x128xf32>
      %29 = vector.broadcast %28 : vector<1x128xf32> to vector<2x128xf32>
      %30 = arith.addf %27, %29 : vector<2x128xf32>
      %31 = arith.negf %30 : vector<2x128xf32>
      %32 = math.exp %31 : vector<2x128xf32>
      %cst_28 = arith.constant 1.000000e+00 : f32
      %33 = vector.broadcast %cst_28 : f32 to vector<2x128xf32>
      %34 = arith.addf %33, %32 : vector<2x128xf32>
      %35 = arith.divf %33, %34 : vector<2x128xf32>
      %c0_29 = arith.constant 0 : index
      %c0_30 = arith.constant 0 : index
      %36 = vector.load %arg8[%c0_29, %c0_30] : memref<2x128xf32, #tpu.memory_space<vmem>>, vector<2x128xf32>
      tpu.vector_store %arg8[%c0_29, %c0_30], %35 {strides = array<i32>} : memref<2x128xf32, #tpu.memory_space<vmem>>, vector<2x128xf32>,
    } else {
    }
    return
  }
  func.func @transform_0(%arg0: i32) -> (i32, i32, i32) {
    %c0_i32 = arith.constant 0 : i32
    %c0_i32_0 = arith.constant 0 : i32
    %c0_i32_1 = arith.constant 0 : i32
    return %c0_i32, %c0_i32_0, %arg0 : i32, i32, i32
  }
  func.func @transform_1(%arg0: i32) -> (i32, i32, i32) {
    %c0_i32 = arith.constant 0 : i32
    %c0_i32_0 = arith.constant 0 : i32
    %c0_i32_1 = arith.constant 0 : i32
    return %c0_i32, %c0_i32_0, %arg0 : i32, i32, i32
  }
  func.func @transform_2(%arg0: i32) -> (i32, i32, i32) {
    %c0_i32 = arith.constant 0 : i32
    %c0_i32_0 = arith.constant 0 : i32
    %c0_i32_1 = arith.constant 0 : i32
    %c0_i32_2 = arith.constant 0 : i32
    return %c0_i32, %c0_i32_0, %c0_i32_1 : i32, i32, i32
  }
  func.func @transform_3(%arg0: i32) -> (i32, i32, i32) {
    %c0_i32 = arith.constant 0 : i32
    %c0_i32_0 = arith.constant 0 : i32
    %c0_i32_1 = arith.constant 0 : i32
    %c0_i32_2 = arith.constant 0 : i32
    return %c0_i32, %c0_i32_0, %c0_i32_1 : i32, i32, i32
  }
  func.func @transform_4(%arg0: i32) -> (i32, i32, i32) {
    %c0_i32 = arith.constant 0 : i32
    %c0_i32_0 = arith.constant 0 : i32
    %c0_i32_1 = arith.constant 0 : i32
    %c0_i32_2 = arith.constant 0 : i32
    return %c0_i32, %c0_i32_0, %c0_i32_1 : i32, i32, i32
  }
  func.func @transform_5(%arg0: i32) -> (i32, i32) {
    %c0_i32 = arith.constant 0 : i32
    %c0_i32_0 = arith.constant 0 : i32
    %c0_i32_1 = arith.constant 0 : i32
    return %c0_i32, %c0_i32_0 : i32, i32
  }
  func.func @transform_6(%arg0: i32) -> (i32, i32) {
    %c0_i32 = arith.constant 0 : i32
    %c0_i32_0 = arith.constant 0 : i32
    %c0_i32_1 = arith.constant 0 : i32
    return %c0_i32, %c0_i32_0 : i32, i32
  }
  func.func @transform_7(%arg0: i32) -> (i32, i32) {
    %c0_i32 = arith.constant 0 : i32
    %c0_i32_0 = arith.constant 0 : i32
    %c0_i32_1 = arith.constant 0 : i32
    return %c0_i32, %c0_i32_0 : i32, i32
  }
}

</mosaic_0001>

<bundles_post_ra>
// kernel: tpu_custom_call.1
= control target key start
LH: loop header
LB: loop body
LE: loop exit
PB: predicated region body
PF: predicated region fallthrough
CT: control target
= control target key end

     0   :  { %12 = vsyncpa [#allocation4], 0  ;;  %s1212_s0 = inlined_call_operand.hbm [shape: f32[2,4,256], index: 0, kind: input, shape index: {}]   ;;  %s1213_s1 = inlined_call_operand.vmem [shape: f32[2,8,256], index: 1, kind: input, shape index: {}]   ;;  %s1214_s2 = inlined_call_operand.vmem [shape: f32[2,12,64], index: 2, kind: input, shape index: {}]   ;;  %s1215_s3 = inlined_call_operand.vmem [shape: f32[2,16,64], index: 3, kind: input, shape index: {}]   ;;  %s1216_s4 = inlined_call_operand.vmem [shape: f32[2,24,16], index: 4, kind: input, shape index: {}]   ;;  %s1217_s5 = inlined_call_operand.vmem [shape: f32[64,128], index: 5, kind: input, shape index: {}]   ;;  %s1218_s6 = inlined_call_operand.vmem [shape: f32[1,128], index: 6, kind: input, shape index: {}]   ;;  %s1219_s7 = inlined_call_operand.hbm [shape: f32[2,128], index: 7, kind: output, shape index: {}]  }
   0x1   :  { %14 = vsyncpa [#allocation4 + $0x1], 0 }
   0x2   :  { %15 = vsyncpa [#allocation5], 0  ;;  %s983_s24 = smov 0   ;;  %s985_s25 = smov 0  }
   0x3   :  { %s987_s26 = smov 0   ;;  %s989_s27 = smov 0  }
   0x4 LB: > { %s1002_s28 = sadd.s32 4294967295, %s933_s27   ;;  %s1005_s29 = sadd.s32 1, %s933_s27   ;;  %s933_s27 = sphi %s989_s27, %s1225_s27   ;;  %s929_s26 = sphi %s987_s26, %s1224_s26   ;;  %s925_s25 = sphi %s985_s25, %s1223_s25   ;;  %s921_s24 = sphi %s983_s24, %s1222_s24  }
   0x5   : > { %s25_s30 = ssub.s32 %s933_s27, %s1005_s29  ;;  %s28_s8 = sadd.s32 1, %s929_s26 }
   0x6   : > { %p26_p0 = scmp.eq.s32.totalorder %s25_s30, 0  ;;  %p35_p1 = scmp.ne.s32.totalorder %s929_s26, %s925_s25 }
   0x7   : > { %p36_p2 = scmp.eq.s32.totalorder %s933_s27, 0  ;;  %p41_p3 = scmp.ne.s32.totalorder %s925_s25, %s921_s24 }
   0x8   : > { %s1015_s9 = scalar_select %p26_p0, %s929_s26, %s28_s8  }
   0x9   : > { %p1017_p4 = por %p36_p2, %p35_p1  ;;  %p42_p5 = scmp.eq.s32.totalorder %s1002_s28, 0 }
   0xa   : > { %p748_p7 = scmp.ge.s32.totalorder %s933_s27, 2 }
   0xb   : > { %p1022_p6 = por %p42_p5, %p41_p3  ;;  %s1028_s12 = sand.u32 (!%p748_p7), 1, %s929_s26  }
   0xc   : > { %228 = sbr.rel (%p748_p7) target bundleno = 42 (0x2a), region = 36  ;;  %s750_s13 = sshll.u32 (!%p748_p7), %s933_s27, 6 }
   0xd   : > { %s749_s14 = sshll.u32 (!%p748_p7), %s1028_s12, 3  ;;  %s1035_s17 = scalar_lea.hbm (!%p748_p7), %s1212_s0, %s750_s13 }
   0xe   : > { %s236_s18 = scalar_lea.vmem (!%p748_p7), [#allocation3], %s749_s14  ;;  %s233_s20 = scalar_lea.sflag (!%p748_p7), [#allocation4], %s1028_s12 }
   0xf   : > { %s242_s19 = sshll.u32 (!%p748_p7), %s236_s18, 4  ;;  %s845_s21 = scalar_lea.hbm (!%p748_p7), %s1035_s17, 128  ;;  %s1037_s19 = int_to_ptr.vmem [resolvable:$true] %s242_s19 }
  0x10   : > { %p846_p8 = scmp.ne.s32.totalorder (!%p748_p7), %s1035_s17, %s845_s21  ;;  %s849_s24 = scalar_lea.hbm (!%p748_p7), %s1212_s0, 256 }
  0x11   : > { %p850_p11 = scmp.lt.s32.totalorder %s1035_s17, %s1212_s0  ;;  %p851_p12 = scmp.lt.s32.totalorder %s849_s24, %s845_s21 }
  0x12   : > { %p847_p9 = pnand %p846_p8, %p1017_p4 }
  0x13   : > { %p852_p13 = por %p851_p12, %p850_p11 }
  0x14   : > { %p848_p10 = pneg %p847_p9 }
  0x16   : > { %p853_p0 = pnand %p852_p13, %p848_p10 }
  0x18   : > { %856 = shalt.err (!%p853_p0)
}
  0x19   : > { %s857_s13 = scalar_lea.vmem %s1037_s19, 128  ;;  %s935_s14 = smov [#allocation3]  }
  0x1a   : > { %p858_p1 = scmp.ne.s32.totalorder %s1037_s19, %s857_s13  ;;  %s861_s15 = sshll.u32 %s935_s14, 4  ;;  %s862_s15 = int_to_ptr.vmem [resolvable:$false] %s861_s15 }
  0x1b   : > { %s863_s16 = scalar_lea.vmem %s862_s15, 256  ;;  %p864_p5 = scmp.lt.s32.totalorder %s1037_s19, %s862_s15 }
  0x1c   : > { %p859_p2 = pnand %p858_p1, %p1017_p4  ;;  %p865_p7 = scmp.lt.s32.totalorder %s863_s16, %s857_s13 }
  0x1e   : > { %p860_p3 = pneg %p859_p2  ;;  %p866_p8 = por %p865_p7, %p864_p5 }
  0x20   : > { %p867_p9 = pnand %p866_p8, %p860_p3 }
  0x22   : > { %870 = shalt.err (!%p867_p9)
}
  0x23   : > { %s936_s18 = smov 128   ;;  %s937_s21 = smov 64  }
  0x24   : > { %s938_s22 = smov 4   ;;  %251 = sbr.rel (!%p1017_p4) target bundleno = 42 (0x2a), region = 44 }
  0x25   : > { %794 = dma.hbm_to_vmem [thread:$0]  (%p1017_p4), %s1035_s17, 128, %s1037_s19, %s233_s20, %s936_s18, %s937_s21, %s938_s22  }
  0x26   : > { %s751_s23 = sshll.u32 (%p1017_p4), %s1028_s12, 4  ;;  %s752_s24 = sshll.u32 (%p1017_p4), %s933_s27, 3 }
  0x27   : > { %s257_s13 = scalar_lea.vmem (%p1017_p4), %s1213_s1, %s752_s24  ;;  %s255_s14 = scalar_lea.vmem (%p1017_p4), [#allocation6], %s751_s23 }
  0x28   : > { %v288_v0 = vld [vmem:[%s257_s13] sm:$0xff] (%p1017_p4)  ;;  %v290_v1 = vld [vmem:[%s257_s13 + $0x10] sm:$0xff] (%p1017_p4) }
  0x29   : > { %289 = vst [vmem:[%s255_s14] sm:$0xff] %v288_v0  ;;  %291 = vst [vmem:[%s255_s14 + $0x8] sm:$0xff] %v290_v1 }
  0x2a PF: > { %p753_p10 = scmp.ge.s32.totalorder %s933_s27, 1  ;;  %p296_p11 = scmp.lt.s32.totalorder %s933_s27, 3 }
  0x2c   : > { %p297_p4 = pnand %p753_p10, %p296_p11 }
  0x2d   : > { %s302_s10 = sand.u32 (!%p297_p4), 1, %s925_s25  }
  0x2e   : > { %300 = sbr.rel (%p297_p4) target bundleno = 659 (0x293), region = 82  ;;  %s754_s12 = sshll.u32 (!%p297_p4), %s302_s10, 3 }
  0x2f   : > { %s303_s17 = scalar_lea.sflag (!%p297_p4), [#allocation4], %s302_s10  ;;  %s306_s19 = scalar_lea.vmem (!%p297_p4), [#allocation3], %s754_s12 }
  0x33   : > { %912 = dma.done.wait (%p1022_p6), %s303_s17, 128  }
  0x34   : > { %914 = vsyncadd (%p1022_p6), %s303_s17, 4294967168  ;;  %s755_s20 = sshll.u32 %s302_s10, 4  ;;  %p756_p12 = scmp.ne.s32.totalorder %s1002_s28, 0 }
  0x35   : > { %s314_s15 = scalar_lea.vmem [#allocation6], %s755_s20 }
  0x36   : > { %346 = sbr.rel (%p756_p12) target bundleno = 61 (0x3d), region = 94 }
  0x3b   : > { %vm347_vm0 = vcmask 517120   ;;  %v939_v2 = vmov 0.0  }
  0x3c   : > { %348 = vst.msk [vmem:[#allocation2] sm:$0x3] %vm347_vm0, %v939_v2 }
  0x3d PF: > { %v349_v3 = vld [vmem:[%s306_s19] sm:$0xf]  ;;  %vm351_vm1 = vcmask 1043456   ;;  %v350_v4 = vld [vmem:[%s306_s19 + $0x4] sm:$0xf]  ;;  %v377_v5 = vld [vmem:[%s314_s15] sm:$0xff]  ;;  %v361_v9 = vlaneseq }
  0x3e   : > { %v352_v6 = vsel %vm351_vm1, %v349_v3, 0.0  ;;  %379 = vadd.xlane.f32.xlu1 %v377_v5  ;;  %v378_v7 = vld [vmem:[%s314_s15 + $0x8] sm:$0xff]  ;;  %v355_v8 = vsel %vm351_vm1, %v350_v4, 0.0  ;;  %vm371_vm2 = vcmask 1041409   ;;  %vm375_vm3 = vcmask 25600   ;;  %p757_p6 = scmp.ge.s32.totalorder %s1002_s28, 1 }
  0x3f   : > { %353 = vadd.xlane.f32.xlu0 %v352_v6  ;;  %v1077_v10 = vand.u32 127, %v361_v9  ;;  %v1079_v11 = vshrl.u32 %v361_v9, 7  ;;  %vm398_vm4 = vcmask 91168  }
  0x41   : > { %v365_v13 = vsub.s32 %v1077_v10, %v1079_v11  ;;  %v386_v19 = vadd.s32 4294967292, %v1077_v10 }
  0x42   : > { %381 = vadd.xlane.f32.xlu1 %v378_v7 }
  0x43   : > { %356 = vadd.xlane.f32.xlu0 %v355_v8  ;;  %v358_v17 = vld [vmem:[#allocation2] sm:$0x3]  ;;  %v389_v22 = vsub.s32 %v386_v19, %v1079_v11 }
  0xc7   : > { %v380_v15 = vpop.xlane.xlu1 %379 }
  0xc8   : > { %v354_v12 = vpop.xlane.xlu0 %353  ;;  %v390_v24 = vrot.slane %v380_v15, %v389_v22 }
  0xc9   : > { %v366_v16 = vrot.slane %v354_v12, %v365_v13 }
  0xcb   : > { %v382_v23 = vpop.xlane.xlu1 %381 }
  0xcc   : > { %v357_v14 = vpop.xlane.xlu0 %356  ;;  %v394_v25 = vrot.slane %v382_v23, %v389_v22 }
  0xcd   : > { %v370_v18 = vrot.slane %v357_v14, %v365_v13 }
  0xce   : > { %v395_v27 = vsel %vm371_vm2, %v394_v25, %v390_v24 }
  0xcf   : > { %v372_v20 = vsel %vm371_vm2, %v370_v18, %v366_v16 }
  0xd0   : > { %v374_v21 = vadd.f32 %v372_v20, %v358_v17 }
  0xd2   : > { %376 = vst.msk [vmem:[#allocation2] sm:$0x3] %vm375_vm3, %v374_v21 }
  0xd8   : > { %403 = sbr.rel (%p757_p6) target bundleno = 392 (0x188), region = 98 }
  0xd9   : > { %v383_v26 = vld [vmem:[#allocation2] sm:$0x3] }
  0xda   : > { %v397_v28 = vadd.f32 %v395_v27, %v383_v26 }
  0xdc   : > { %399 = vst.msk [vmem:[#allocation2] sm:$0x3] %vm398_vm4, %v397_v28 }
  0xdd   : > { %v406_v29 = vld [vmem:[%s1214_s2 + $0x10] sm:$0xff]  ;;  %vm408_vm5 = vcmask 523264   ;;  %v404_v30 = vld [vmem:[%s1214_s2] sm:$0xff]  ;;  %v407_v31 = vld [vmem:[%s1214_s2 + $0x18] sm:$0xf]  ;;  %vm412_vm6 = vcmask 519168  }
  0xde   : > { %v416_v32 = vsel %vm408_vm5, %v406_v29, 0.0  ;;  %v409_v33 = vsel %vm408_vm5, %v404_v30, 0.0  ;;  %v405_v34 = vld [vmem:[%s1214_s2 + $0x8] sm:$0xf]  ;;  %v419_v35 = vsel %vm412_vm6, %v407_v31, 0.0  ;;  %v453_v38 = vld [vmem:[%s1215_s3] sm:$0xff] }
  0xdf   : > { %417 = vadd.xlane.f32.xlu1 %v416_v32  ;;  %410 = vadd.xlane.f32.xlu0 %v409_v33  ;;  %v413_v36 = vsel %vm412_vm6, %v405_v34, 0.0  ;;  %v454_v37 = vld [vmem:[%s1215_s3 + $0x8] sm:$0xff]  ;;  %v457_v40 = vsel %vm408_vm5, %v453_v38, 0.0  ;;  %v456_v41 = vld [vmem:[%s1215_s3 + $0x18] sm:$0xff]  ;;  %v455_v42 = vld [vmem:[%s1215_s3 + $0x10] sm:$0xff]  ;;  %vm506_vm7 = vcmask 130048  }
  0xe0   : > { %v460_v39 = vsel %vm408_vm5, %v454_v37, 0.0  ;;  %v466_v43 = vsel %vm408_vm5, %v456_v41, 0.0  ;;  %v463_v44 = vsel %vm408_vm5, %v455_v42, 0.0  ;;  %v501_v45 = vld [vmem:[%s1216_s4 + $0x8] sm:$0xff]  ;;  %v500_v46 = vld [vmem:[%s1216_s4] sm:$0xff]  ;;  %v503_v50 = vld [vmem:[%s1216_s4 + $0x18] sm:$0xff] }
  0xe1   : > { %v510_v47 = vsel %vm506_vm7, %v501_v45, 0.0  ;;  %v507_v48 = vsel %vm506_vm7, %v500_v46, 0.0  ;;  %v504_v49 = vld [vmem:[%s1216_s4 + $0x20] sm:$0xff]  ;;  %v516_v52 = vsel %vm506_vm7, %v503_v50, 0.0  ;;  %v505_v53 = vld [vmem:[%s1216_s4 + $0x28] sm:$0xff]  ;;  %v502_v54 = vld [vmem:[%s1216_s4 + $0x10] sm:$0xff] }
  0xe2   : > { %v519_v51 = vsel %vm506_vm7, %v504_v49, 0.0  ;;  %v522_v55 = vsel %vm506_vm7, %v505_v53, 0.0  ;;  %v513_v56 = vsel %vm506_vm7, %v502_v54, 0.0  ;;  %v427_v57 = vadd.s32 4294967284, %v1077_v10 }
  0xe3   : > { %420 = vadd.xlane.f32.xlu1 %v419_v35  ;;  %414 = vadd.xlane.f32.xlu0 %v413_v36  ;;  %v432_v58 = vadd.s32 4294967276, %v1077_v10  ;;  %vm437_vm8 = vcmask 228512   ;;  %v479_v1 = vadd.s32 4294967264, %v1077_v10  ;;  %v474_v2 = vadd.s32 4294967272, %v1077_v10  ;;  %v422_v7 = vld [vmem:[#allocation2] sm:$0x3] }
  0xe4   : > { %v430_v61 = vsub.s32 %v427_v57, %v1079_v11  ;;  %vm451_vm9 = vcmask 189536   ;;  %vm484_vm10 = vcmask 326912   ;;  %v537_v24 = vadd.s32 4294967248, %v1077_v10 }
  0xe5   : > { %v435_v62 = vsub.s32 %v432_v58, %v1079_v11  ;;  %v482_v16 = vsub.s32 %v479_v1, %v1079_v11  ;;  %v477_v17 = vsub.s32 %v474_v2, %v1079_v11  ;;  %v532_v25 = vadd.s32 4294967256, %v1077_v10 }
  0xe6   : > { %v544_v30 = vadd.s32 4294967240, %v1077_v10  ;;  %vm498_vm11 = vcmask 320704   ;;  %v540_v33 = vsub.s32 %v537_v24, %v1079_v11  ;;  %vm542_vm12 = vcmask 458112  }
  0xe7   : > { %461 = vadd.xlane.f32.xlu1 %v460_v39  ;;  %458 = vadd.xlane.f32.xlu0 %v457_v40  ;;  %v535_v34 = vsub.s32 %v532_v25, %v1079_v11  ;;  %vm549_vm13 = vcmask 523712   ;;  %vm568_vm14 = vcmask 517440  }
  0xe8   : > { %v547_v38 = vsub.s32 %v544_v30, %v1079_v11 }
  0xeb   : > { %467 = vadd.xlane.f32.xlu1 %v466_v43  ;;  %464 = vadd.xlane.f32.xlu0 %v463_v44 }
  0xef   : > { %511 = vadd.xlane.f32.xlu1 %v510_v47  ;;  %508 = vadd.xlane.f32.xlu0 %v507_v48 }
  0xf3   : > { %520 = vadd.xlane.f32.xlu1 %v519_v51  ;;  %517 = vadd.xlane.f32.xlu0 %v516_v52 }
  0xf7   : > { %523 = vadd.xlane.f32.xlu1 %v522_v55  ;;  %514 = vadd.xlane.f32.xlu0 %v513_v56 }
 0x168   : > { %v418_v59 = vpop.xlane.xlu1 %417  ;;  %v411_v60 = vpop.xlane.xlu0 %410 }
 0x169   : > { %v442_v3 = vrot.slane %v418_v59, %v430_v61  ;;  %v431_v4 = vrot.slane %v411_v60, %v430_v61 }
 0x16c   : > { %v421_v63 = vpop.xlane.xlu1 %420  ;;  %v415_v0 = vpop.xlane.xlu0 %414 }
 0x16d   : > { %v446_v5 = vrot.slane %v421_v63, %v435_v62  ;;  %v436_v6 = vrot.slane %v415_v0, %v435_v62 }
 0x16f   : > { %v447_v8 = vsel %vm437_vm8, %v446_v5, %v442_v3  ;;  %v438_v9 = vsel %vm437_vm8, %v436_v6, %v431_v4 }
 0x170   : > { %v448_v12 = vsel %vm371_vm2, %v447_v8, %v438_v9  ;;  %v462_v13 = vpop.xlane.xlu1 %461  ;;  %v459_v14 = vpop.xlane.xlu0 %458 }
 0x171   : > { %v450_v15 = vadd.f32 %v448_v12, %v422_v7  ;;  %v483_v20 = vrot.slane %v462_v13, %v482_v16  ;;  %v478_v21 = vrot.slane %v459_v14, %v477_v17 }
 0x173   : > { %452 = vst.msk [vmem:[#allocation2] sm:$0x3] %vm451_vm9, %v450_v15  ;;  %v485_v29 = vsel %vm484_vm10, %v483_v20, %v478_v21 }
 0x174   : > { %v468_v18 = vpop.xlane.xlu1 %467  ;;  %v465_v19 = vpop.xlane.xlu0 %464 }
 0x175   : > { %v493_v22 = vrot.slane %v468_v18, %v482_v16  ;;  %v489_v23 = vrot.slane %v465_v19, %v477_v17 }
 0x177   : > { %v494_v26 = vsel %vm484_vm10, %v493_v22, %v489_v23 }
 0x178   : > { %v512_v27 = vpop.xlane.xlu1 %511  ;;  %v509_v28 = vpop.xlane.xlu0 %508  ;;  %v495_v32 = vsel %vm371_vm2, %v494_v26, %v485_v29 }
 0x179   : > { %v541_v39 = vrot.slane %v512_v27, %v540_v33  ;;  %v536_v40 = vrot.slane %v509_v28, %v535_v34 }
 0x17a   : > { %v469_v31 = vld [vmem:[#allocation2] sm:$0x3] }
 0x17b   : > { %v497_v35 = vadd.f32 %v495_v32, %v469_v31  ;;  %v543_v46 = vsel %vm542_vm12, %v541_v39, %v536_v40 }
 0x17c   : > { %v521_v36 = vpop.xlane.xlu1 %520  ;;  %v518_v37 = vpop.xlane.xlu0 %517 }
 0x17d   : > { %499 = vst.msk [vmem:[#allocation2] sm:$0x3] %vm498_vm11, %v497_v35  ;;  %v558_v41 = vrot.slane %v521_v36, %v540_v33  ;;  %v554_v42 = vrot.slane %v518_v37, %v535_v34 }
 0x17f   : > { %v559_v47 = vsel %vm542_vm12, %v558_v41, %v554_v42 }
 0x180   : > { %v524_v10 = vpop.xlane.xlu1 %523  ;;  %v515_v43 = vpop.xlane.xlu0 %514 }
 0x181   : > { %v563_v44 = vrot.slane %v524_v10, %v547_v38  ;;  %v548_v45 = vrot.slane %v515_v43, %v547_v38 }
 0x183   : > { %v564_v48 = vsel %vm549_vm13, %v563_v44, %v559_v47  ;;  %v550_v49 = vsel %vm549_vm13, %v548_v45, %v543_v46 }
 0x184   : > { %v525_v50 = vld [vmem:[#allocation2] sm:$0x3]  ;;  %v565_v51 = vsel %vm371_vm2, %v564_v48, %v550_v49 }
 0x185   : > { %v567_v52 = vadd.f32 %v565_v51, %v525_v50 }
 0x187   : > { %569 = vst.msk [vmem:[#allocation2] sm:$0x3] %vm568_vm14, %v567_v52 }
 0x188 PF: > { %p758_p13 = scmp.ne.s32.totalorder %s1002_s28, 1 }
 0x18a   : > { %573 = sbr.rel (%p758_p13) target bundleno = 644 (0x284), region = 102 }
 0x18f   : > { %v582_v11 = vld [vmem:[%s1217_s5 + $0x38] sm:$0xff]  ;;  %v940_v53 = vmov 0.0   ;;  %v581_v54 = vld [vmem:[%s1217_s5 + $0x30] sm:$0xff]  ;;  %vm941_vm15 = vmmov 0   ;;  %v580_v55 = vld [vmem:[%s1217_s5 + $0x28] sm:$0xff]  ;;  %vm590_vm0 = vcmask 523264  }
 0x190   : > { %775 = vmatprep.subr.mxu0 %v940_v53  ;;  %791 = vmatprep.mubr.msk.f32.mxu0 %vm941_vm15, %v940_v53  ;;  %v579_v56 = vld [vmem:[%s1217_s5 + $0x20] sm:$0xff]  ;;  %v578_v57 = vld [vmem:[%s1217_s5 + $0x18] sm:$0xff]  ;;  %v577_v58 = vld [vmem:[%s1217_s5 + $0x10] sm:$0xff] }
 0x191   : > { %776 = vmatpush3.msra.mxu0 %v582_v11  ;;  %v576_v59 = vld [vmem:[%s1217_s5 + $0x8] sm:$0xff]  ;;  %v575_v60 = vld [vmem:[%s1217_s5] sm:$0xff] }
 0x192   : > { %777 = vmatprep.subr.mxu0 %v940_v53  ;;  %v574_v61 = vld [vmem:[#allocation2] sm:$0x3] }
 0x193   : > { %778 = vmatpush3.msra.mxu0 %v581_v54  ;;  %v759_v62 = vld [vmem:[%s1218_s6] ss:$0 sm:$0xff] }
 0x194   : > { %779 = vmatprep.subr.mxu0 %v940_v53 }
 0x195   : > { %780 = vmatpush3.msra.mxu0 %v580_v55 }
 0x196   : > { %781 = vmatprep.subr.mxu0 %v940_v53 }
 0x197   : > { %782 = vmatpush3.msra.mxu0 %v579_v56 }
 0x198   : > { %783 = vmatprep.subr.mxu0 %v940_v53 }
 0x199   : > { %784 = vmatpush3.msra.mxu0 %v578_v57 }
 0x19a   : > { %785 = vmatprep.subr.mxu0 %v940_v53 }
 0x19b   : > { %786 = vmatpush3.msra.mxu0 %v577_v58 }
 0x19c   : > { %787 = vmatprep.subr.mxu0 %v940_v53 }
 0x19d   : > { %788 = vmatpush3.msra.mxu0 %v576_v59 }
 0x19e   : > { %789 = vmatprep.subr.mxu0 %v940_v53 }
 0x19f   : > { %790 = vmatpush3.msra.mxu0 %v575_v60 }
 0x1a0   : > { %792 = vmatmul.mubr.msk.f32.vlgmr.msra.gmra.mxu0 %vm590_vm0, %v574_v61 }
 0x260   : > { %v660_v63 = vpop.f32.mrf.mxu0 }
 0x261   : > { %v661_v0 = vadd.f32 %v759_v62, %v660_v63 }
 0x262   : > { %v793_v1 = vpop.f32.mrf.mxu0 }
 0x263   : > { %v761_v2 = vmul.f32 -1.442695, %v661_v0 }
 0x265   : > { %841 = vpow2.f32 %v761_v2 }
 0x272   : > { %v842_v3 = vpop.eup %841 }
 0x273   : > { %v667_v4 = vadd.f32 1.0, %v842_v3 }
 0x275   : > { %843 = vrcp.f32 %v667_v4 }
 0x282   : > { %v844_v5 = vpop.eup %843 }
 0x283   : > { %670 = vst [vmem:[#allocation7] sm:$0x3] %v844_v5 }
 0x284 PF: > { %p800_p0 = scmp.eq.s32.totalorder %s1002_s28, 1  ;;  %s942_s13 = smov [#allocation7]  }
 0x285   : > { %s678_s14 = sshll.u32 %s942_s13, 4  ;;  %s679_s14 = int_to_ptr.vmem [resolvable:$true] %s678_s14 }
 0x286   : > { %s871_s10 = scalar_lea.vmem %s679_s14, 32  ;;  %p878_p5 = scmp.lt.s32.totalorder %s679_s14, %s679_s14 }
 0x287   : > { %p872_p1 = scmp.ne.s32.totalorder %s679_s14, %s871_s10  ;;  %p879_p7 = scmp.lt.s32.totalorder %s871_s10, %s871_s10 }
 0x289   : > { %p873_p2 = pnand %p872_p1, %p800_p0  ;;  %p880_p8 = por %p879_p7, %p878_p5 }
 0x28b   : > { %p874_p3 = pneg %p873_p2 }
 0x28d   : > { %p881_p9 = pnand %p880_p8, %p874_p3 }
 0x28f   : > { %884 = shalt.err (!%p881_p9)
}
 0x290   : > { %797 = dma.vmem_to_hbm [thread:$0]  (%p800_p0), %s679_s14, 32, %s1219_s7, [#allocation5]  }
 0x291   : > { %916 = dma.done.wait (%p800_p0), [#allocation5], 32  }
 0x292   : > { %918 = vsyncadd (%p800_p0), [#allocation5], 4294967264 }
 0x293 PF: > { %p18_p10 = scmp.ge.s32.totalorder %s1005_s29, 4   ;;  %s1222_s24 = smov %s925_s25 }
 0x294   : > { %s1223_s25 = smov %s929_s26  ;;  %s1224_s26 = smov %s1015_s9 }
 0x295   : > { %s1225_s27 = smov %s1005_s29  ;;  %20 = sbr.rel (!%p18_p10) target bundleno = 4 (0x4), region = 143 }
 0x29a   :  { %691 = vsyncpa [#allocation4], 1 }
 0x29b   :  { %693 = vsyncpa [#allocation4 + $0x1], 1 }
 0x29c   :  { %694 = vsyncpa [#allocation5], 1 }
 0x29d   :  { %696 = vsyncpa [#allocation5 + $0x1], 1 }

</bundles_post_ra>
